<compile_context>
chip_gen: v7x
topology: tpu7x:2x2x1
jax: 0.10.0
libtpu: 0.0.40
codegen_flags: <defaults>
</compile_context>

<pallas_src>
import math

import jax
import jax.numpy as jnp
from jax.experimental import pallas as pl
from jax.experimental.pallas import tpu as pltpu

HIDDEN_DIM_1 = 600
HIDDEN_DIM_2 = 100
OUTPUT_DIM = 2

# Lane-aligned (padded) sizes used inside the kernel.
H1_PAD = 640    # 600 -> 640  (5 * 128)
H2_PAD = 128    # 100 -> 128
OUT_PAD = 128   # 2   -> 128  (lane-dense output store)


def _mlp_kernel(x_ref, w1_ref, b1_ref, w2_ref, b2_ref, w3_ref, b3_ref, o_ref):
    # Layer 1: Linear + ReLU   (bf16 MXU inputs, f32 accumulate)
    x = x_ref[...].astype(jnp.bfloat16)
    h1 = jnp.dot(x, w1_ref[...], preferred_element_type=jnp.float32)
    h1 = jnp.maximum(h1 + b1_ref[...], 0.0)
    # Layer 2: Linear + ReLU
    h2 = jnp.dot(h1.astype(jnp.bfloat16), w2_ref[...],
                 preferred_element_type=jnp.float32)
    h2 = jnp.maximum(h2 + b2_ref[...], 0.0)
    # Layer 3: Linear + Sigmoid (padded output columns are sliced off outside)
    logits = jnp.dot(h2.astype(jnp.bfloat16), w3_ref[...],
                     preferred_element_type=jnp.float32)
    logits = logits + b3_ref[...]
    o_ref[...] = jax.nn.sigmoid(logits)


def neural_network_forward_batched(x, params, *, block_m=128):
    """x: (B, in_dim) float32; each row goes through the module's forward.

    Weights stay VMEM-resident across the batch grid (constant block index);
    the batch axis is 'parallel' so v7x can split it across its 2 TCs.
    """
    w1, b1, w2, b2, w3, b3 = params
    x = jnp.asarray(x, jnp.float32)
    b, in_dim = x.shape
    assert w1.shape[0] == in_dim, (w1.shape, in_dim)

    b_pad = pl.cdiv(b, block_m) * block_m
    if b_pad != b:
        x = jnp.pad(x, ((0, b_pad - b), (0, 0)))

    const = lambda shape: pl.BlockSpec(shape, lambda i: (0, 0))
    out = pl.pallas_call(
        _mlp_kernel,
        out_shape=jax.ShapeDtypeStruct((b_pad, OUT_PAD), jnp.float32),
        grid=(b_pad // block_m,),
        in_specs=[
            pl.BlockSpec((block_m, in_dim), lambda i: (i, 0)),  # x tiles over batch
            const(w1.shape), const(b1.shape),                   # weights: VMEM-resident
            const(w2.shape), const(b2.shape),
            const(w3.shape), const(b3.shape),
        ],
        out_specs=pl.BlockSpec((block_m, OUT_PAD), lambda i: (i, 0)),
        compiler_params=pltpu.CompilerParams(
            dimension_semantics=("parallel",),
            vmem_limit_bytes=8 << 20,   # footprint is well under 1 MiB double-buffered
        ),
    )(x, w1, b1, w2, b2, w3, b3)
    return out[:b, :OUTPUT_DIM]


def neural_network_forward(x, params):
    """Exact module semantics: x -> view(1, -1) -> MLP -> (1, 2)."""
    x2d = jnp.asarray(x, jnp.float32).reshape(1, -1)
    return neural_network_forward_batched(x2d, params)


def init_params(key, input_dim):
    """Parameter init mirroring the PyTorch __init__, stored (in, out).

    layer_1 / layer_2 weights: kaiming_uniform (nonlinearity='relu');
    layer_3 weight + all biases: nn.Linear default init.
    Weights are zero-padded to lane-aligned shapes and cast to bf16;
    biases stay f32 (they join the f32 accumulator in-kernel).
    """
    ks = jax.random.split(key, 6)

    def kaiming_uniform(k, fan_in, fan_out):
        bound = math.sqrt(2.0) * math.sqrt(3.0 / fan_in)   # gain=sqrt(2) for relu
        return jax.random.uniform(k, (fan_in, fan_out), jnp.float32, -bound, bound)

    def default_weight(k, fan_in, fan_out):
        bound = 1.0 / math.sqrt(fan_in)                    # kaiming_uniform_(a=sqrt(5))
        return jax.random.uniform(k, (fan_in, fan_out), jnp.float32, -bound, bound)

    def default_bias(k, fan_in, fan_out):
        bound = 1.0 / math.sqrt(fan_in)
        return jax.random.uniform(k, (1, fan_out), jnp.float32, -bound, bound)

    def pad_to(a, shape):
        return jnp.pad(a, [(0, t - s) for s, t in zip(a.shape, shape)])

    w1 = pad_to(kaiming_uniform(ks[0], input_dim, HIDDEN_DIM_1),
                (input_dim, H1_PAD)).astype(jnp.bfloat16)
    b1 = pad_to(default_bias(ks[1], input_dim, HIDDEN_DIM_1), (1, H1_PAD))
    w2 = pad_to(kaiming_uniform(ks[2], HIDDEN_DIM_1, HIDDEN_DIM_2),
                (H1_PAD, H2_PAD)).astype(jnp.bfloat16)
    b2 = pad_to(default_bias(ks[3], HIDDEN_DIM_1, HIDDEN_DIM_2), (1, H2_PAD))
    w3 = pad_to(default_weight(ks[4], HIDDEN_DIM_2, OUTPUT_DIM),
                (H2_PAD, OUT_PAD)).astype(jnp.bfloat16)
    b3 = pad_to(default_bias(ks[5], HIDDEN_DIM_2, OUTPUT_DIM), (1, OUT_PAD))
    return (w1, b1, w2, b2, w3, b3)


def _reference(x, params):
    """Pure-JAX reference mirroring the kernel's precision (bf16 MXU inputs,
    f32 accumulation / activations)."""
    w1, b1, w2, b2, w3, b3 = params
    h1 = jnp.dot(x.astype(jnp.bfloat16), w1, preferred_element_type=jnp.float32)
    h1 = jnp.maximum(h1 + b1, 0.0)
    h2 = jnp.dot(h1.astype(jnp.bfloat16), w2, preferred_element_type=jnp.float32)
    h2 = jnp.maximum(h2 + b2, 0.0)
    logits = jnp.dot(h2.astype(jnp.bfloat16), w3, preferred_element_type=jnp.float32)
    logits = logits + b3
    return jax.nn.sigmoid(logits)[:, :OUTPUT_DIM]


if __name__ == "__main__":
    key = jax.random.PRNGKey(0)
    k_x, k_xb, k_p = jax.random.split(key, 3)

    input_dim = 16  # np.shape(x)[1] in the source script; x.view(1,-1) -> (1, input_dim)
    params = init_params(k_p, input_dim)

    # --- single-sample path (exact module semantics: view(1, -1)) ---
    x_single = jax.random.normal(k_x, (1, input_dim), dtype=jnp.float32)
    out_single = jax.block_until_ready(neural_network_forward(x_single, params))
    ref_single = _reference(x_single.reshape(1, -1), params)
    assert out_single.shape == (1, OUTPUT_DIM)
    assert jnp.allclose(out_single, ref_single, atol=1e-3, rtol=1e-3)

    # --- batched path (each row processed independently; fills MXU rows) ---
    batch = 8
    x_batch = jax.random.normal(k_xb, (batch, input_dim), dtype=jnp.float32)
    out_batch = jax.block_until_ready(neural_network_forward_batched(x_batch, params))
    ref_batch = _reference(x_batch, params)
    assert out_batch.shape == (batch, OUTPUT_DIM)
    assert jnp.allclose(out_batch, ref_batch, atol=1e-3, rtol=1e-3)

    print("KERNEL_OK")
</pallas_src>

<mosaic_0001>
module attributes {stable_mosaic.version = 11 : i64} {
  func.func @_mlp_kernel(%arg0: i32, %arg1: memref<128x16xf32, #tpu.memory_space<vmem>>, %arg2: memref<16x640xbf16, #tpu.memory_space<vmem>>, %arg3: memref<1x640xf32, #tpu.memory_space<vmem>>, %arg4: memref<640x128xbf16, #tpu.memory_space<vmem>>, %arg5: memref<1x128xf32, #tpu.memory_space<vmem>>, %arg6: memref<128x128xbf16, #tpu.memory_space<vmem>>, %arg7: memref<1x128xf32, #tpu.memory_space<vmem>>, %arg8: memref<128x128xf32, #tpu.memory_space<vmem>>) attributes {dimension_semantics = [#tpu.dimension_semantics<parallel>], iteration_bounds = array<i64: 1>, scalar_prefetch = 0 : i64, scratch_operands = 0 : i64, tpu.core_type = #tpu.core_type<tc>, window_params = [{transform_indices = @transform_0, window_bounds = array<i64: 128, 16>}, {pipeline_mode = #tpu.pipeline_mode<synchronous>, transform_indices = @transform_1, window_bounds = array<i64: 16, 640>}, {pipeline_mode = #tpu.pipeline_mode<synchronous>, transform_indices = @transform_2, window_bounds = array<i64: 1, 640>}, {pipeline_mode = #tpu.pipeline_mode<synchronous>, transform_indices = @transform_3, window_bounds = array<i64: 640, 128>}, {pipeline_mode = #tpu.pipeline_mode<synchronous>, transform_indices = @transform_4, window_bounds = array<i64: 1, 128>}, {pipeline_mode = #tpu.pipeline_mode<synchronous>, transform_indices = @transform_5, window_bounds = array<i64: 128, 128>}, {pipeline_mode = #tpu.pipeline_mode<synchronous>, transform_indices = @transform_6, window_bounds = array<i64: 1, 128>}, {transform_indices = @transform_7, window_bounds = array<i64: 128, 128>}]} {
    %c0 = arith.constant 0 : index
    %c0_0 = arith.constant 0 : index
    %0 = vector.load %arg1[%c0, %c0_0] : memref<128x16xf32, #tpu.memory_space<vmem>>, vector<128x16xf32>
    %1 = arith.truncf %0 : vector<128x16xf32> to vector<128x16xbf16>
    %c0_1 = arith.constant 0 : index
    %c0_2 = arith.constant 0 : index
    %2 = vector.load %arg2[%c0_1, %c0_2] : memref<16x640xbf16, #tpu.memory_space<vmem>>, vector<16x640xbf16>
    %cst = arith.constant dense<0.000000e+00> : vector<128x640xf32>
    %3 = tpu.matmul %1, %2, %cst {dimension_numbers = #tpu.dot_dimension_numbers<[1], [0], [0], [1], [0, 0, 1, 1], [], []>} : vector<128x16xbf16>, vector<16x640xbf16>, vector<128x640xf32> -> vector<128x640xf32>
    %c0_3 = arith.constant 0 : index
    %c0_4 = arith.constant 0 : index
    %4 = vector.load %arg3[%c0_3, %c0_4] : memref<1x640xf32, #tpu.memory_space<vmem>>, vector<1x640xf32>
    %5 = vector.broadcast %4 : vector<1x640xf32> to vector<128x640xf32>
    %6 = arith.addf %3, %5 : vector<128x640xf32>
    %cst_5 = arith.constant 0.000000e+00 : f32
    %7 = vector.broadcast %cst_5 : f32 to vector<128x640xf32>
    %8 = arith.maximumf %6, %7 : vector<128x640xf32>
    %9 = arith.truncf %8 : vector<128x640xf32> to vector<128x640xbf16>
    %c0_6 = arith.constant 0 : index
    %c0_7 = arith.constant 0 : index
    %10 = vector.load %arg4[%c0_6, %c0_7] : memref<640x128xbf16, #tpu.memory_space<vmem>>, vector<640x128xbf16>
    %cst_8 = arith.constant dense<0.000000e+00> : vector<128x128xf32>
    %11 = tpu.matmul %9, %10, %cst_8 {dimension_numbers = #tpu.dot_dimension_numbers<[1], [0], [0], [1], [0, 0, 1, 1], [], []>} : vector<128x640xbf16>, vector<640x128xbf16>, vector<128x128xf32> -> vector<128x128xf32>
    %c0_9 = arith.constant 0 : index
    %c0_10 = arith.constant 0 : index
    %12 = vector.load %arg5[%c0_9, %c0_10] : memref<1x128xf32, #tpu.memory_space<vmem>>, vector<1x128xf32>
    %13 = vector.broadcast %12 : vector<1x128xf32> to vector<128x128xf32>
    %14 = arith.addf %11, %13 : vector<128x128xf32>
    %cst_11 = arith.constant 0.000000e+00 : f32
    %15 = vector.broadcast %cst_11 : f32 to vector<128x128xf32>
    %16 = arith.maximumf %14, %15 : vector<128x128xf32>
    %17 = arith.truncf %16 : vector<128x128xf32> to vector<128x128xbf16>
    %c0_12 = arith.constant 0 : index
    %c0_13 = arith.constant 0 : index
    %18 = vector.load %arg6[%c0_12, %c0_13] : memref<128x128xbf16, #tpu.memory_space<vmem>>, vector<128x128xbf16>
    %cst_14 = arith.constant dense<0.000000e+00> : vector<128x128xf32>
    %19 = tpu.matmul %17, %18, %cst_14 {dimension_numbers = #tpu.dot_dimension_numbers<[1], [0], [0], [1], [0, 0, 1, 1], [], []>} : vector<128x128xbf16>, vector<128x128xbf16>, vector<128x128xf32> -> vector<128x128xf32>
    %c0_15 = arith.constant 0 : index
    %c0_16 = arith.constant 0 : index
    %20 = vector.load %arg7[%c0_15, %c0_16] : memref<1x128xf32, #tpu.memory_space<vmem>>, vector<1x128xf32>
    %21 = vector.broadcast %20 : vector<1x128xf32> to vector<128x128xf32>
    %22 = arith.addf %19, %21 : vector<128x128xf32>
    %23 = arith.negf %22 : vector<128x128xf32>
    %24 = math.exp %23 : vector<128x128xf32>
    %cst_17 = arith.constant 1.000000e+00 : f32
    %25 = vector.broadcast %cst_17 : f32 to vector<128x128xf32>
    %26 = arith.addf %25, %24 : vector<128x128xf32>
    %27 = arith.divf %25, %26 : vector<128x128xf32>
    %c0_18 = arith.constant 0 : index
    %c0_19 = arith.constant 0 : index
    %28 = vector.load %arg8[%c0_18, %c0_19] : memref<128x128xf32, #tpu.memory_space<vmem>>, vector<128x128xf32>
    tpu.vector_store %arg8[%c0_18, %c0_19], %27 {strides = array<i32>} : memref<128x128xf32, #tpu.memory_space<vmem>>, vector<128x128xf32>,
    return
  }
  func.func @transform_0(%arg0: i32) -> (i32, i32) {
    %c0_i32 = arith.constant 0 : i32
    %c0_i32_0 = arith.constant 0 : i32
    return %arg0, %c0_i32 : i32, i32
  }
  func.func @transform_1(%arg0: i32) -> (i32, i32) {
    %c0_i32 = arith.constant 0 : i32
    %c0_i32_0 = arith.constant 0 : i32
    %c0_i32_1 = arith.constant 0 : i32
    return %c0_i32, %c0_i32_0 : i32, i32
  }
  func.func @transform_2(%arg0: i32) -> (i32, i32) {
    %c0_i32 = arith.constant 0 : i32
    %c0_i32_0 = arith.constant 0 : i32
    %c0_i32_1 = arith.constant 0 : i32
    return %c0_i32, %c0_i32_0 : i32, i32
  }
  func.func @transform_3(%arg0: i32) -> (i32, i32) {
    %c0_i32 = arith.constant 0 : i32
    %c0_i32_0 = arith.constant 0 : i32
    %c0_i32_1 = arith.constant 0 : i32
    return %c0_i32, %c0_i32_0 : i32, i32
  }
  func.func @transform_4(%arg0: i32) -> (i32, i32) {
    %c0_i32 = arith.constant 0 : i32
    %c0_i32_0 = arith.constant 0 : i32
    %c0_i32_1 = arith.constant 0 : i32
    return %c0_i32, %c0_i32_0 : i32, i32
  }
  func.func @transform_5(%arg0: i32) -> (i32, i32) {
    %c0_i32 = arith.constant 0 : i32
    %c0_i32_0 = arith.constant 0 : i32
    %c0_i32_1 = arith.constant 0 : i32
    return %c0_i32, %c0_i32_0 : i32, i32
  }
  func.func @transform_6(%arg0: i32) -> (i32, i32) {
    %c0_i32 = arith.constant 0 : i32
    %c0_i32_0 = arith.constant 0 : i32
    %c0_i32_1 = arith.constant 0 : i32
    return %c0_i32, %c0_i32_0 : i32, i32
  }
  func.func @transform_7(%arg0: i32) -> (i32, i32) {
    %c0_i32 = arith.constant 0 : i32
    %c0_i32_0 = arith.constant 0 : i32
    return %arg0, %c0_i32 : i32, i32
  }
}

</mosaic_0001>

<bundles_post_ra>
// kernel: tpu_custom_call.1
= control target key start
LH: loop header
LB: loop body
LE: loop exit
PB: predicated region body
PF: predicated region fallthrough
CT: control target
= control target key end

     0   :  { %12 = vsyncpa [#allocation3], 0  ;;  %s2470_s0 = inlined_call_operand.vmem [shape: f32[128,16], index: 0, kind: input, shape index: {}]   ;;  %s2471_s1 = inlined_call_operand.vmem [shape: bf16[16,640], index: 1, kind: input, shape index: {}]   ;;  %s2472_s2 = inlined_call_operand.vmem [shape: f32[1,640], index: 2, kind: input, shape index: {}]   ;;  %s2473_s3 = inlined_call_operand.hbm [shape: bf16[640,128], index: 3, kind: input, shape index: {}]   ;;  %s2474_s4 = inlined_call_operand.vmem [shape: f32[1,128], index: 4, kind: input, shape index: {}]   ;;  %s2475_s5 = inlined_call_operand.vmem [shape: bf16[128,128], index: 5, kind: input, shape index: {}]   ;;  %s2476_s6 = inlined_call_operand.vmem [shape: f32[1,128], index: 6, kind: input, shape index: {}]   ;;  %s2477_s7 = inlined_call_operand.hbm [shape: f32[128,128], index: 7, kind: output, shape index: {}]  }
   0x1   :  { %13 = vsyncpa [#allocation4], 0  ;;  %s2054_s24 = smov [#allocation2]   ;;  %s2006_s28 = scalar_lea.hbm %s2473_s3, 5120 }
   0x2   :  { %s25_s25 = sshll.u32 %s2054_s24, 4  ;;  %p2007_p0 = scmp.ne.s32.totalorder %s2473_s3, %s2006_s28  ;;  %s26_s25 = int_to_ptr.vmem [resolvable:$true] %s25_s25 }
   0x3   :  { %p2010_p1 = scmp.lt.u32.totalorder %s2006_s28, %s2473_s3 }
   0x5   :  { %p2012_p2 = pnand %p2010_p1, %p2007_p0 }
   0x7   :  { %2015 = shalt.err (!%p2012_p2)
}
   0x8   :  { %s2016_s10 = scalar_lea.vmem %s26_s25, 5120  ;;  %p2021_p4 = scmp.lt.s32.totalorder %s26_s25, %s26_s25 }
   0x9   :  { %p2017_p3 = scmp.ne.s32.totalorder %s26_s25, %s2016_s10  ;;  %p2022_p5 = scmp.lt.s32.totalorder %s2016_s10, %s2016_s10 }
   0xb   :  { %p2023_p6 = por %p2022_p5, %p2021_p4 }
   0xd   :  { %p2024_p7 = pnand %p2023_p6, %p2017_p3 }
   0xf   :  { %2027 = shalt.err (!%p2024_p7)
}
  0x10   :  { %s2055_s11 = smov 64   ;;  %s2056_s12 = smov 4  }
  0x11   :  { %31 = dma.hbm_to_vmem [thread:$0]  %s2473_s3, 5120, %s26_s25, [#allocation3], %s2055_s11, %s2055_s11, %s2056_s12  }
  0x12   :  { %2050 = dma.done.wait [#allocation3], 5120  }
  0x13   :  { %2051 = vsyncadd [#allocation3], 4294962176  ;;  %v2057_v0 = vmov 0   ;;  %v1887_v1 = vld [vmem:[%s2471_s1 + $0x4] ss:$20 sps:$4 sm:$0xff]   ;;  %v43_v4 = vld [vmem:[%s2470_s0 + $0x8] sm:$0xff]  ;;  %v74_v63 = vlaneseq }
  0x14   :  { %182 = vmatprep.mubr.bf16.mxu0 %v2057_v0  ;;  %242 = vmatprep.mubr.bf16.mxu1 %v2057_v0  ;;  %v1889_v2 = vld [vmem:[%s2471_s1] ss:$20 sps:$4 sm:$0xff]   ;;  %v55_v7 = vld [vmem:[%s2470_s0 + $0x68] sm:$0xff]  ;;  %vm125_vm0 = vcmask 130048   ;;  %v1893_v12 = vld [vmem:[%s2471_s1 + $0x10] ss:$20 sps:$4 sm:$0xff]  }
  0x15   :  { %v42_v3 = vld [vmem:[%s2470_s0] sm:$0xff]  ;;  %150 = vmatprep.subr.bf16.mxu0 %v1887_v1  ;;  %1878 = vmatprep.subr.bf16.mxu1 %v1887_v1  ;;  %v1890_v9 = vld [vmem:[%s2471_s1 + $0x8] ss:$20 sps:$4 sm:$0xff]   ;;  %v44_v11 = vld [vmem:[%s2470_s0 + $0x10] sm:$0xff] }
  0x16   :  { %v2127_v5 = vpack.c.bf16 %v43_v4, %v42_v3  ;;  %v54_v6 = vld [vmem:[%s2470_s0 + $0x60] sm:$0xff]  ;;  %151 = vmatpush1.bf16.msra.mxu0 %v1889_v2  ;;  %1879 = vmatpush1.bf16.msra.mxu1 %v1889_v2  ;;  %v45_v13 = vld [vmem:[%s2470_s0 + $0x18] sm:$0xff]  ;;  %v56_v14 = vld [vmem:[%s2470_s0 + $0x70] sm:$0xff] }
  0x17   :  { %v2135_v8 = vpack.c.bf16 %v55_v7, %v54_v6  ;;  %v1892_v10 = vld [vmem:[%s2471_s1 + $0xc] ss:$20 sps:$4 sm:$0xff]   ;;  %v57_v15 = vld [vmem:[%s2470_s0 + $0x78] sm:$0xff]  ;;  %1796 = vmatprep.subr.bf16.mxu0 %v1893_v12  ;;  %v2164_v17 = vpack.c.bf16 %v45_v13, %v44_v11  ;;  %v48_v23 = vld [vmem:[%s2470_s0 + $0x30] sm:$0xff] }
  0x18   :  { %263 = vmatprep.subr.bf16.mxu1 %v1892_v10  ;;  %v1894_v16 = vld [vmem:[#allocation2 + $0x40] sm:$0xff]   ;;  %v2166_v18 = vpack.c.bf16 %v57_v15, %v56_v14  ;;  %v47_v20 = vld [vmem:[%s2470_s0 + $0x28] sm:$0xff]  ;;  %v49_v25 = vld [vmem:[%s2470_s0 + $0x38] sm:$0xff] }
  0x19   :  { %1537 = vmatmul.mubr.msk.bf16.vlgmr.msra.gmra.mrb[0].mxu0 %vm125_vm0, %v2127_v5  ;;  %1543 = vmatmul.mubr.msk.bf16.vlgmr.msra.gmra.mrb[0].mxu1 %vm125_vm0, %v2135_v8  ;;  %v46_v19 = vld [vmem:[%s2470_s0 + $0x20] sm:$0xff]  ;;  %v1896_v24 = vld [vmem:[#allocation2 + $0x48] sm:$0xff]   ;;  %v1898_v28 = vld [vmem:[#allocation2 + $0x50] sm:$0xff]   ;;  %v61_v29 = vpack.c.bf16 %v49_v25, %v48_v23 }
  0x1a   :  { %192 = vmatprep.mubr.bf16.mxu0 %v2057_v0  ;;  %252 = vmatprep.mubr.bf16.mxu1 %v2057_v0  ;;  %v60_v21 = vpack.c.bf16 %v47_v20, %v46_v19  ;;  %v1895_v22 = vld [vmem:[#allocation2] sm:$0xff]   ;;  %v1897_v27 = vld [vmem:[#allocation2 + $0x8] sm:$0xff]   ;;  %v1899_v30 = vld [vmem:[#allocation2 + $0x10] sm:$0xff]  }
  0x1b   :  { %264 = vmatpush1.bf16.msra.mxu1 %v1890_v9  ;;  %1797 = vmatpush3.bf16.msra.mxu0 %v1893_v12  ;;  %v1908_v26 = vld [vmem:[#allocation2 + $0xc0] sm:$0xff]   ;;  %v1900_v31 = vld [vmem:[#allocation2 + $0x58] sm:$0xff]   ;;  %v51_v33 = vld [vmem:[%s2470_s0 + $0x48] sm:$0xff] }
  0x1c   :  { %1636 = vmatprep.subr.bf16.mxu1 %v1894_v16  ;;  %1700 = vmatprep.subr.bf16.mxu0 %v1908_v26  ;;  %v50_v32 = vld [vmem:[%s2470_s0 + $0x40] sm:$0xff]  ;;  %v1901_v34 = vld [vmem:[#allocation2 + $0x18] sm:$0xff]   ;;  %v1904_v38 = vld [vmem:[#allocation2 + $0x68] sm:$0xff]  }
  0x1d   :  { %v1902_v35 = vld [vmem:[#allocation2 + $0x60] sm:$0xff]   ;;  %v62_v36 = vpack.c.bf16 %v51_v33, %v50_v32  ;;  %v52_v39 = vld [vmem:[%s2470_s0 + $0x50] sm:$0xff]  ;;  %v53_v40 = vld [vmem:[%s2470_s0 + $0x58] sm:$0xff] }
  0x1e   :  { %v1903_v37 = vld [vmem:[#allocation2 + $0x20] sm:$0xff]   ;;  %v1905_v41 = vld [vmem:[#allocation2 + $0x28] sm:$0xff]   ;;  %v1906_v42 = vld [vmem:[#allocation2 + $0x70] sm:$0xff]   ;;  %v63_v43 = vpack.c.bf16 %v53_v40, %v52_v39 }
  0x1f   :  { %v1907_v44 = vld [vmem:[#allocation2 + $0x30] sm:$0xff]   ;;  %v1909_v45 = vld [vmem:[#allocation2 + $0x80] sm:$0xff]   ;;  %v1910_v46 = vld [vmem:[#allocation2 + $0xc8] sm:$0xff]  }
  0x20   :  { %v1911_v47 = vld [vmem:[#allocation2 + $0x88] sm:$0xff]   ;;  %v1914_v48 = vld [vmem:[#allocation2 + $0xd0] sm:$0xff]   ;;  %v1912_v50 = vld [vmem:[#allocation2 + $0x78] sm:$0xff]  }
  0x21   :  { %1538 = vmatmul.mubr.msk.bf16.gmra.mrb[4].mxu0 %vm125_vm0, %v2164_v17  ;;  %1544 = vmatmul.mubr.msk.bf16.gmra.mrb[4].mxu1 %vm125_vm0, %v2166_v18  ;;  %v1915_v49 = vld [vmem:[#allocation2 + $0x90] sm:$0xff]   ;;  %v1916_v51 = vld [vmem:[#allocation2 + $0xd8] sm:$0xff]   ;;  %v1919_v54 = vld [vmem:[#allocation2 + $0xe0] sm:$0xff]  }
  0x22   :  { %202 = vmatprep.mubr.bf16.mxu0 %v2057_v0  ;;  %295 = vmatprep.mubr.bf16.mxu1 %v2057_v0  ;;  %v1913_v52 = vld [vmem:[#allocation2 + $0x38] sm:$0xff]   ;;  %v1920_v55 = vld [vmem:[#allocation2 + $0xa0] sm:$0xff]   ;;  %v1921_v56 = vld [vmem:[#allocation2 + $0xe8] sm:$0xff]  }
  0x23   :  { %v1917_v53 = vld [vmem:[#allocation2 + $0x98] sm:$0xff]   ;;  %v1922_v57 = vld [vmem:[#allocation2 + $0xa8] sm:$0xff]   ;;  %v2236_v58 = vld [vmem:[#allocation2 + $0x100] sm:$0xff]  }
  0x24   :  { %v1924_v59 = vld [vmem:[#allocation2 + $0xf0] sm:$0xff]   ;;  %v1926_v61 = vld [vmem:[#allocation2 + $0xf8] sm:$0xff]   ;;  %v2245_v2 = vld [vmem:[%s2472_s2] sm:$0x1f] }
  0x25   :  { %v1925_v60 = vld [vmem:[#allocation2 + $0xb0] sm:$0xff]   ;;  %v1927_v62 = vld [vmem:[#allocation2 + $0xb8] sm:$0xff]  }
  0x29   :  { %1539 = vmatmul.mubr.msk.bf16.gmra.mrb[8].mxu0 %vm125_vm0, %v60_v21  ;;  %1545 = vmatmul.mubr.msk.bf16.vlgmr.msra.gmra.mrb[8].mxu1 %vm125_vm0, %v2127_v5 }
  0x2a   :  { %212 = vmatprep.mubr.bf16.mxu0 %v2057_v0  ;;  %305 = vmatprep.mubr.bf16.mxu1 %v2057_v0 }
  0x2b   :  { %1637 = vmatpush3.bf16.msra.mxu1 %v1895_v22 }
  0x2c   :  { %1638 = vmatprep.subr.bf16.mxu1 %v1896_v24 }
  0x2f   :  { %1639 = vmatpush3.bf16.msra.mxu1 %v1897_v27 }
  0x30   :  { %1640 = vmatprep.subr.bf16.mxu1 %v1898_v28 }
  0x31   :  { %1540 = vmatmul.mubr.msk.bf16.gmra.mrb[12].mxu0 %vm125_vm0, %v61_v29  ;;  %1546 = vmatmul.mubr.msk.bf16.gmra.mrb[12].mxu1 %vm125_vm0, %v2164_v17 }
  0x32   :  { %222 = vmatprep.mubr.bf16.mxu0 %v2057_v0  ;;  %315 = vmatprep.mubr.bf16.mxu1 %v2057_v0 }
  0x33   :  { %1641 = vmatpush3.bf16.msra.mxu1 %v1899_v30 }
  0x34   :  { %1642 = vmatprep.subr.bf16.mxu1 %v1900_v31 }
  0x37   :  { %1643 = vmatpush3.bf16.msra.mxu1 %v1901_v34 }
  0x38   :  { %1644 = vmatprep.subr.bf16.mxu1 %v1902_v35 }
  0x39   :  { %1541 = vmatmul.mubr.msk.bf16.gmra.mrb[16].mxu0 %vm125_vm0, %v62_v36  ;;  %1547 = vmatmul.mubr.msk.bf16.gmra.mrb[16].mxu1 %vm125_vm0, %v60_v21 }
  0x3a   :  { %232 = vmatprep.mubr.bf16.mxu0 %v2057_v0  ;;  %325 = vmatprep.mubr.bf16.mxu1 %v2057_v0 }
  0x3b   :  { %1645 = vmatpush3.bf16.msra.mxu1 %v1903_v37 }
  0x3c   :  { %1646 = vmatprep.subr.bf16.mxu1 %v1904_v38 }
  0x3f   :  { %1647 = vmatpush3.bf16.msra.mxu1 %v1905_v41  ;;  %v1923_v41 = vld [vmem:[#allocation2 + $0x108] sm:$0xff]  }
  0x40   :  { %1648 = vmatprep.subr.bf16.mxu1 %v1906_v42 }
  0x41   :  { %1542 = vmatmul.mubr.msk.bf16.gmra.mrb[20].mxu0 %vm125_vm0, %v63_v43  ;;  %1548 = vmatmul.mubr.msk.bf16.gmra.mrb[20].mxu1 %vm125_vm0, %v61_v29 }
  0x42   :  { %335 = vmatprep.mubr.bf16.mxu1 %v2057_v0  ;;  %1798 = vmatprep.mubr.msk.bf16.mxu0 %vm125_vm0, %v2127_v5 }
  0x43   :  { %1649 = vmatpush3.bf16.msra.mxu1 %v1907_v44 }
  0x44   :  { %1650 = vmatprep.subr.bf16.mxu1 %v1912_v50 }
  0x47   :  { %1651 = vmatpush3.bf16.msra.mxu1 %v1913_v52 }
  0x48   :  { %1814 = vmatprep.subr.bf16.mxu1 %v2236_v58 }
  0x49   :  { %1549 = vmatmul.mubr.msk.bf16.gmra.mrb[24].mxu1 %vm125_vm0, %v62_v36  ;;  %1799 = vmatmul.mubr.msk.bf16.vlgmr.msra.gmra.mrb[24].mxu0 %vm125_vm0, %v2164_v17 }
  0x4a   :  { %345 = vmatprep.mubr.bf16.mxu1 %v2057_v0  ;;  %1802 = vmatprep.mubr.msk.bf16.mxu0 %vm125_vm0, %v60_v21 }
  0x4b   :  { %1701 = vmatpush3.bf16.msra.mxu0 %v1909_v45 }
  0x4c   :  { %1702 = vmatprep.subr.bf16.mxu0 %v1910_v46 }
  0x4f   :  { %1703 = vmatpush3.bf16.msra.mxu0 %v1911_v47 }
  0x50   :  { %1704 = vmatprep.subr.bf16.mxu0 %v1914_v48 }
  0x51   :  { %1550 = vmatmul.mubr.msk.bf16.gmra.mrb[28].mxu1 %vm125_vm0, %v63_v43  ;;  %1803 = vmatmul.mubr.msk.bf16.gmra.mrb[28].mxu0 %vm125_vm0, %v61_v29 }
  0x52   :  { %355 = vmatprep.mubr.bf16.mxu1 %v2057_v0  ;;  %1806 = vmatprep.mubr.msk.bf16.mxu0 %vm125_vm0, %v62_v36 }
  0x53   :  { %1705 = vmatpush3.bf16.msra.mxu0 %v1915_v49 }
  0x54   :  { %1706 = vmatprep.subr.bf16.mxu0 %v1916_v51 }
  0x57   :  { %1707 = vmatpush3.bf16.msra.mxu0 %v1917_v53 }
  0x58   :  { %1708 = vmatprep.subr.bf16.mxu0 %v1919_v54 }
  0x59   :  { %1551 = vmatmul.mubr.msk.bf16.gmra.mrb[32].mxu1 %vm125_vm0, %v2135_v8  ;;  %1807 = vmatmul.mubr.msk.bf16.gmra.mrb[32].mxu0 %vm125_vm0, %v63_v43 }
  0x5a   :  { %365 = vmatprep.mubr.bf16.mxu1 %v2057_v0  ;;  %1810 = vmatprep.mubr.msk.bf16.mxu0 %vm125_vm0, %v2135_v8  ;;  %v2239_v0 = vshrl.u32 %v74_v63, 7 }
  0x5b   :  { %1709 = vmatpush3.bf16.msra.mxu0 %v1920_v55 }
  0x5c   :  { %1710 = vmatprep.subr.bf16.mxu0 %v1921_v56  ;;  %v76_v1 = vsub.s32 0, %v2239_v0  ;;  %v80_v3 = vsub.s32 1, %v2239_v0  ;;  %v84_v40 = vsub.s32 2, %v2239_v0  ;;  %v88_v46 = vsub.s32 3, %v2239_v0 }
  0x5e   :  { %v2249_v4 = vrot.slane %v2245_v2, %v76_v1  ;;  %v2252_v5 = vrot.slane %v2245_v2, %v80_v3  ;;  %v2281_v1 = vrot.slane %v2245_v2, %v88_v46  ;;  %v1931_v46 = vld [vmem:[#allocation2 + $0x128] sm:$0xff]  }
  0x5f   :  { %1711 = vmatpush3.bf16.msra.mxu0 %v1922_v57 }
  0x60   :  { %1712 = vmatprep.subr.bf16.mxu0 %v1924_v59  ;;  %v2278_v59 = vrot.slane %v2245_v2, %v84_v40 }
  0x61   :  { %1552 = vmatmul.mubr.msk.bf16.gmra.mrb[36].mxu1 %vm125_vm0, %v2166_v18  ;;  %1811 = vmatmul.mubr.msk.bf16.gmra.mrb[36].mxu0 %vm125_vm0, %v2166_v18 }
  0x63   :  { %1713 = vmatpush3.bf16.msra.mxu0 %v1925_v60  ;;  %v1928_v60 = vld [vmem:[#allocation2 + $0x110] sm:$0xff]  }
  0x64   :  { %1714 = vmatprep.subr.bf16.mxu0 %v1926_v61 }
  0x67   :  { %1715 = vmatpush3.bf16.msra.mxu0 %v1927_v62 }
  0xec   :  { %v184_v6 = vpop.f32.mrb[0].mxu0  ;;  %v244_v7 = vpop.f32.mrb[0].mxu1 }
  0xed   :  { %v185_v8 = vadd.f32 %v184_v6, %v2249_v4  ;;  %v186_v9 = vpop.f32.mrb[1].mxu0  ;;  %v245_v10 = vadd.f32 %v244_v7, %v2249_v4  ;;  %v246_v11 = vpop.f32.mrb[1].mxu1 }
  0xee   :  { %v187_v12 = vadd.f32 %v186_v9, %v2252_v5  ;;  %v188_v13 = vpop.f32.mrb[2].mxu0  ;;  %v247_v14 = vadd.f32 %v246_v11, %v2252_v5  ;;  %v248_v15 = vpop.f32.mrb[2].mxu1 }
  0xef   :  { %v189_v16 = vadd.f32 %v188_v13, %v2249_v4  ;;  %v190_v17 = vpop.f32.mrb[3].mxu0  ;;  %v533_v18 = vmax.f32 %v245_v10, 0.0  ;;  %v249_v19 = vadd.f32 %v248_v15, %v2249_v4  ;;  %v250_v20 = vpop.f32.mrb[3].mxu1  ;;  %v473_v24 = vmax.f32 %v185_v8, 0.0 }
  0xf0   :  { %v191_v21 = vadd.f32 %v190_v17, %v2252_v5  ;;  %v534_v22 = vmax.f32 %v247_v14, 0.0  ;;  %v251_v23 = vadd.f32 %v250_v20, %v2252_v5  ;;  %v474_v27 = vmax.f32 %v187_v12, 0.0  ;;  %v1929_v14 = vld [vmem:[#allocation2 + $0x118] sm:$0xff]  }
  0xf1   :  { %v478_v25 = vmax.f32 %v189_v16, 0.0  ;;  %v538_v26 = vmax.f32 %v249_v19, 0.0 }
  0xf2   :  { %v479_v28 = vmax.f32 %v191_v21, 0.0  ;;  %v539_v29 = vmax.f32 %v251_v23, 0.0 }
  0xf3   :  { %v553_v30 = vpack.c.bf16 %v478_v25, %v473_v24  ;;  %v2262_v31 = vpack.c.bf16 %v538_v26, %v533_v18 }
  0xf4   :  { %v554_v32 = vpack.c.bf16 %v479_v28, %v474_v27  ;;  %v194_v33 = vpop.f32.mrb[4].mxu0  ;;  %v2264_v34 = vpack.c.bf16 %v539_v29, %v534_v22  ;;  %v254_v35 = vpop.f32.mrb[4].mxu1 }
  0xf5   :  { %v195_v36 = vadd.f32 %v194_v33, %v2249_v4  ;;  %v196_v37 = vpop.f32.mrb[5].mxu0  ;;  %v255_v38 = vadd.f32 %v254_v35, %v2249_v4  ;;  %v256_v39 = vpop.f32.mrb[5].mxu1 }
  0xf6   :  { %v197_v42 = vadd.f32 %v196_v37, %v2252_v5  ;;  %v198_v43 = vpop.f32.mrb[6].mxu0  ;;  %952 = vmatprep.mubr.bf16.mxu1 %v554_v32  ;;  %v257_v44 = vadd.f32 %v256_v39, %v2252_v5  ;;  %v258_v45 = vpop.f32.mrb[6].mxu1 }
  0xf7   :  { %v199_v47 = vadd.f32 %v198_v43, %v2249_v4  ;;  %v200_v48 = vpop.f32.mrb[7].mxu0  ;;  %953 = vmatmul.mubr.bf16.vlgmr.msra.gmra.mrb[40].mxu1 %v553_v30  ;;  %v543_v49 = vmax.f32 %v255_v38, 0.0  ;;  %v259_v50 = vadd.f32 %v258_v45, %v2249_v4  ;;  %v260_v51 = vpop.f32.mrb[7].mxu1  ;;  %v483_v55 = vmax.f32 %v195_v36, 0.0  ;;  %v1930_v30 = vld [vmem:[#allocation2 + $0x120] sm:$0xff]  }
  0xf8   :  { %v201_v52 = vadd.f32 %v200_v48, %v2252_v5  ;;  %1815 = vmatpush3.bf16.msra.mxu1 %v2236_v58  ;;  %v544_v53 = vmax.f32 %v257_v44, 0.0  ;;  %v261_v54 = vadd.f32 %v260_v51, %v2252_v5  ;;  %v484_v61 = vmax.f32 %v197_v42, 0.0 }
  0xf9   :  { %v488_v56 = vmax.f32 %v199_v47, 0.0  ;;  %v548_v57 = vmax.f32 %v259_v50, 0.0  ;;  %1816 = vmatprep.subr.bf16.mxu1 %v1923_v41 }
  0xfa   :  { %v489_v62 = vmax.f32 %v201_v52, 0.0  ;;  %v549_v63 = vmax.f32 %v261_v54, 0.0 }
  0xfb   :  { %v558_v3 = vpack.c.bf16 %v488_v56, %v483_v55  ;;  %v2283_v6 = vpack.c.bf16 %v548_v57, %v543_v49 }
  0xfc   :  { %v559_v58 = vpack.c.bf16 %v489_v62, %v484_v61  ;;  %v2285_v7 = vpack.c.bf16 %v549_v63, %v544_v53  ;;  %v204_v8 = vpop.f32.mrb[8].mxu0  ;;  %v297_v9 = vpop.f32.mrb[8].mxu1  ;;  %1817 = vmatpush3.bf16.msra.mxu1 %v1923_v41 }
  0xfd   :  { %v205_v10 = vadd.f32 %v204_v8, %v2249_v4  ;;  %v298_v11 = vadd.f32 %v297_v9, %v2278_v59  ;;  %v206_v12 = vpop.f32.mrb[9].mxu0  ;;  %v299_v13 = vpop.f32.mrb[9].mxu1  ;;  %1818 = vmatprep.subr.bf16.mxu1 %v1928_v60 }
  0xfe   :  { %v207_v15 = vadd.f32 %v206_v12, %v2252_v5  ;;  %v300_v16 = vadd.f32 %v299_v13, %v2281_v1  ;;  %v208_v17 = vpop.f32.mrb[10].mxu0  ;;  %v301_v18 = vpop.f32.mrb[10].mxu1  ;;  %960 = vmatprep.mubr.bf16.mxu1 %v559_v58 }
  0xff   :  { %v475_v19 = vmax.f32 %v298_v11, 0.0  ;;  %v209_v20 = vadd.f32 %v208_v17, %v2249_v4  ;;  %v302_v21 = vadd.f32 %v301_v18, %v2278_v59  ;;  %v210_v22 = vpop.f32.mrb[11].mxu0  ;;  %v303_v23 = vpop.f32.mrb[11].mxu1  ;;  %961 = vmatmul.mubr.bf16.gmra.mrb[44].mxu1 %v558_v3  ;;  %v493_v27 = vmax.f32 %v205_v10, 0.0  ;;  %v1932_v3 = vld [vmem:[#allocation2 + $0x130] sm:$0xff]  }
 0x100   :  { %v476_v24 = vmax.f32 %v300_v16, 0.0  ;;  %v211_v25 = vadd.f32 %v210_v22, %v2252_v5  ;;  %v304_v26 = vadd.f32 %v303_v23, %v2281_v1  ;;  %1819 = vmatpush3.bf16.msra.mxu1 %v1928_v60  ;;  %v494_v32 = vmax.f32 %v207_v15, 0.0 }
 0x101   :  { %v498_v28 = vmax.f32 %v209_v20, 0.0  ;;  %v480_v29 = vmax.f32 %v302_v21, 0.0  ;;  %1820 = vmatprep.subr.bf16.mxu1 %v1929_v14  ;;  %v1933_v20 = vld [vmem:[#allocation2 + $0x138] sm:$0xff]  }
 0x102   :  { %v499_v33 = vmax.f32 %v211_v25, 0.0  ;;  %v481_v35 = vmax.f32 %v304_v26, 0.0 }
 0x103   :  { %v563_v36 = vpack.c.bf16 %v498_v28, %v493_v27  ;;  %v555_v37 = vpack.c.bf16 %v480_v29, %v475_v19 }
 0x104   :  { %v564_v38 = vpack.c.bf16 %v499_v33, %v494_v32  ;;  %v556_v39 = vpack.c.bf16 %v481_v35, %v476_v24  ;;  %v214_v40 = vpop.f32.mrb[12].mxu0  ;;  %v307_v41 = vpop.f32.mrb[12].mxu1  ;;  %1821 = vmatpush3.bf16.msra.mxu1 %v1929_v14 }
 0x105   :  { %v215_v42 = vadd.f32 %v214_v40, %v2249_v4  ;;  %v308_v43 = vadd.f32 %v307_v41, %v2278_v59  ;;  %v216_v44 = vpop.f32.mrb[13].mxu0  ;;  %v309_v45 = vpop.f32.mrb[13].mxu1  ;;  %1822 = vmatprep.subr.bf16.mxu1 %v1930_v30 }
 0x106   :  { %v217_v47 = vadd.f32 %v216_v44, %v2252_v5  ;;  %v310_v48 = vadd.f32 %v309_v45, %v2281_v1  ;;  %v218_v49 = vpop.f32.mrb[14].mxu0  ;;  %v311_v50 = vpop.f32.mrb[14].mxu1  ;;  %968 = vmatprep.mubr.bf16.mxu1 %v564_v38  ;;  %1049 = vmatprep.mubr.bf16.mxu0 %v556_v39 }
 0x107   :  { %v485_v51 = vmax.f32 %v308_v43, 0.0  ;;  %v219_v52 = vadd.f32 %v218_v49, %v2249_v4  ;;  %v312_v53 = vadd.f32 %v311_v50, %v2278_v59  ;;  %v220_v54 = vpop.f32.mrb[15].mxu0  ;;  %v313_v55 = vpop.f32.mrb[15].mxu1  ;;  %969 = vmatmul.mubr.bf16.gmra.mrb[48].mxu1 %v563_v36  ;;  %1050 = vmatmul.mubr.bf16.vlgmr.msra.gmra.mrb[40].mxu0 %v555_v37  ;;  %v503_v61 = vmax.f32 %v215_v42, 0.0 }
 0x108   :  { %v486_v56 = vmax.f32 %v310_v48, 0.0  ;;  %v221_v57 = vadd.f32 %v220_v54, %v2252_v5  ;;  %v314_v60 = vadd.f32 %v313_v55, %v2281_v1  ;;  %1823 = vmatpush3.bf16.msra.mxu1 %v1930_v30  ;;  %v504_v58 = vmax.f32 %v217_v47, 0.0 }
 0x109   :  { %v508_v62 = vmax.f32 %v219_v52, 0.0  ;;  %v490_v63 = vmax.f32 %v312_v53, 0.0  ;;  %1824 = vmatprep.subr.bf16.mxu1 %v1931_v46 }
 0x10a   :  { %v509_v8 = vmax.f32 %v221_v57, 0.0  ;;  %v491_v9 = vmax.f32 %v314_v60, 0.0 }
 0x10b   :  { %v568_v10 = vpack.c.bf16 %v508_v62, %v503_v61  ;;  %v560_v11 = vpack.c.bf16 %v490_v63, %v485_v51  ;;  %v92_v51 = vsub.s32 4, %v2239_v0 }
 0x10c   :  { %v569_v12 = vpack.c.bf16 %v509_v8, %v504_v58  ;;  %v561_v13 = vpack.c.bf16 %v491_v9, %v486_v56  ;;  %v224_v14 = vpop.f32.mrb[16].mxu0  ;;  %v317_v15 = vpop.f32.mrb[16].mxu1  ;;  %1825 = vmatpush3.bf16.msra.mxu1 %v1931_v46 }
 0x10d   :  { %v225_v16 = vadd.f32 %v224_v14, %v2249_v4  ;;  %v318_v17 = vadd.f32 %v317_v15, %v2278_v59  ;;  %v226_v18 = vpop.f32.mrb[17].mxu0  ;;  %v319_v19 = vpop.f32.mrb[17].mxu1  ;;  %1826 = vmatprep.subr.bf16.mxu1 %v1932_v3 }
 0x10e   :  { %v227_v21 = vadd.f32 %v226_v18, %v2252_v5  ;;  %v320_v22 = vadd.f32 %v319_v19, %v2281_v1  ;;  %v228_v23 = vpop.f32.mrb[18].mxu0  ;;  %v321_v24 = vpop.f32.mrb[18].mxu1  ;;  %976 = vmatprep.mubr.bf16.mxu1 %v569_v12  ;;  %1057 = vmatprep.mubr.bf16.mxu0 %v561_v13 }
 0x10f   :  { %v495_v25 = vmax.f32 %v318_v17, 0.0  ;;  %v229_v26 = vadd.f32 %v228_v23, %v2249_v4  ;;  %v322_v27 = vadd.f32 %v321_v24, %v2278_v59  ;;  %v230_v28 = vpop.f32.mrb[19].mxu0  ;;  %v323_v29 = vpop.f32.mrb[19].mxu1  ;;  %977 = vmatmul.mubr.bf16.gmra.mrb[52].mxu1 %v568_v10  ;;  %1058 = vmatmul.mubr.bf16.gmra.mrb[44].mxu0 %v560_v11  ;;  %v513_v35 = vmax.f32 %v225_v16, 0.0 }
 0x110   :  { %v496_v30 = vmax.f32 %v320_v22, 0.0  ;;  %v231_v32 = vadd.f32 %v230_v28, %v2252_v5  ;;  %v324_v33 = vadd.f32 %v323_v29, %v2281_v1  ;;  %1827 = vmatpush3.bf16.msra.mxu1 %v1932_v3  ;;  %v514_v38 = vmax.f32 %v227_v21, 0.0 }
 0x111   :  { %v518_v36 = vmax.f32 %v229_v26, 0.0  ;;  %v500_v37 = vmax.f32 %v322_v27, 0.0  ;;  %1828 = vmatprep.subr.bf16.mxu1 %v1933_v20  ;;  %v2321_v10 = vrot.slane %v2245_v2, %v92_v51 }
 0x112   :  { %v519_v39 = vmax.f32 %v231_v32, 0.0  ;;  %v501_v40 = vmax.f32 %v324_v33, 0.0 }
 0x113   :  { %v573_v41 = vpack.c.bf16 %v518_v36, %v513_v35  ;;  %v565_v42 = vpack.c.bf16 %v500_v37, %v495_v25 }
 0x114   :  { %v574_v43 = vpack.c.bf16 %v519_v39, %v514_v38  ;;  %v566_v44 = vpack.c.bf16 %v501_v40, %v496_v30  ;;  %v234_v45 = vpop.f32.mrb[20].mxu0  ;;  %v327_v46 = vpop.f32.mrb[20].mxu1  ;;  %1829 = vmatpush3.bf16.msra.mxu1 %v1933_v20 }
 0x115   :  { %v235_v47 = vadd.f32 %v234_v45, %v2249_v4  ;;  %v328_v48 = vadd.f32 %v327_v46, %v2278_v59  ;;  %v236_v49 = vpop.f32.mrb[21].mxu0  ;;  %v329_v50 = vpop.f32.mrb[21].mxu1 }
 0x116   :  { %v237_v52 = vadd.f32 %v236_v49, %v2252_v5  ;;  %v330_v53 = vadd.f32 %v329_v50, %v2281_v1  ;;  %v238_v54 = vpop.f32.mrb[22].mxu0  ;;  %v331_v55 = vpop.f32.mrb[22].mxu1  ;;  %984 = vmatprep.mubr.bf16.mxu1 %v574_v43  ;;  %1065 = vmatprep.mubr.bf16.mxu0 %v566_v44 }
 0x117   :  { %v505_v56 = vmax.f32 %v328_v48, 0.0  ;;  %v239_v57 = vadd.f32 %v238_v54, %v2249_v4  ;;  %v332_v60 = vadd.f32 %v331_v55, %v2278_v59  ;;  %v240_v61 = vpop.f32.mrb[23].mxu0  ;;  %v333_v62 = vpop.f32.mrb[23].mxu1  ;;  %985 = vmatmul.mubr.bf16.gmra.mrb[56].mxu1 %v573_v41  ;;  %1066 = vmatmul.mubr.bf16.gmra.mrb[48].mxu0 %v565_v42  ;;  %v523_v58 = vmax.f32 %v235_v47, 0.0 }
 0x118   :  { %v506_v63 = vmax.f32 %v330_v53, 0.0  ;;  %v241_v0 = vadd.f32 %v240_v61, %v2252_v5  ;;  %v334_v3 = vadd.f32 %v333_v62, %v2281_v1  ;;  %v524_v11 = vmax.f32 %v237_v52, 0.0 }
 0x119   :  { %v528_v8 = vmax.f32 %v239_v57, 0.0  ;;  %v510_v9 = vmax.f32 %v332_v60, 0.0 }
 0x11a   :  { %v529_v12 = vmax.f32 %v241_v0, 0.0  ;;  %v511_v4 = vmax.f32 %v334_v3, 0.0 }
 0x11b   :  { %v578_v13 = vpack.c.bf16 %v528_v8, %v523_v58  ;;  %v570_v14 = vpack.c.bf16 %v510_v9, %v505_v56 }
 0x11c   :  { %v579_v15 = vpack.c.bf16 %v529_v12, %v524_v11  ;;  %v571_v16 = vpack.c.bf16 %v511_v4, %v506_v63  ;;  %v337_v17 = vpop.f32.mrb[24].mxu1  ;;  %v1800_v18 = vpop.f32.mrb[24].mxu0 }
 0x11d   :  { %v338_v19 = vadd.f32 %v337_v17, %v2278_v59  ;;  %v339_v5 = vpop.f32.mrb[25].mxu1  ;;  %v419_v20 = vadd.f32 %v1800_v18, %v2321_v10  ;;  %v410_v21 = vpop.f32.mrb[25].mxu0 }
 0x11e   :  { %v340_v22 = vadd.f32 %v339_v5, %v2281_v1  ;;  %v341_v23 = vpop.f32.mrb[26].mxu1  ;;  %992 = vmatprep.mubr.bf16.mxu1 %v579_v15  ;;  %1073 = vmatprep.mubr.bf16.mxu0 %v571_v16  ;;  %v411_v2 = vadd.f32 %v410_v21, %v2321_v10  ;;  %v1801_v24 = vpop.f32.mrb[26].mxu0 }
 0x11f   :  { %v515_v25 = vmax.f32 %v338_v19, 0.0  ;;  %v342_v26 = vadd.f32 %v341_v23, %v2278_v59  ;;  %v343_v27 = vpop.f32.mrb[27].mxu1  ;;  %993 = vmatmul.mubr.bf16.gmra.mrb[60].mxu1 %v578_v13  ;;  %1074 = vmatmul.mubr.bf16.gmra.mrb[52].mxu0 %v570_v14  ;;  %v487_v28 = vmax.f32 %v419_v20, 0.0  ;;  %v422_v29 = vadd.f32 %v1801_v24, %v2321_v10  ;;  %v413_v30 = vpop.f32.mrb[27].mxu0 }
 0x120   :  { %v516_v32 = vmax.f32 %v340_v22, 0.0  ;;  %v344_v33 = vadd.f32 %v343_v27, %v2281_v1  ;;  %1000 = vmatprep.mubr.bf16.mxu1 %v2264_v34  ;;  %v477_v35 = vmax.f32 %v411_v2, 0.0  ;;  %v414_v36 = vadd.f32 %v413_v30, %v2321_v10 }
 0x121   :  { %v520_v37 = vmax.f32 %v342_v26, 0.0  ;;  %v492_v38 = vmax.f32 %v422_v29, 0.0 }
 0x122   :  { %v521_v39 = vmax.f32 %v344_v33, 0.0  ;;  %v482_v40 = vmax.f32 %v414_v36, 0.0 }
 0x123   :  { %v575_v41 = vpack.c.bf16 %v520_v37, %v515_v25  ;;  %v2332_v42 = vpack.c.bf16 %v492_v38, %v487_v28 }
 0x124   :  { %v576_v43 = vpack.c.bf16 %v521_v39, %v516_v32  ;;  %v347_v44 = vpop.f32.mrb[28].mxu1  ;;  %v557_v45 = vpack.c.bf16 %v482_v40, %v477_v35  ;;  %v1804_v46 = vpop.f32.mrb[28].mxu0 }
 0x125   :  { %v348_v47 = vadd.f32 %v347_v44, %v2278_v59  ;;  %v349_v48 = vpop.f32.mrb[29].mxu1  ;;  %v435_v49 = vadd.f32 %v1804_v46, %v2321_v10  ;;  %v426_v34 = vpop.f32.mrb[29].mxu0 }
 0x126   :  { %v350_v50 = vadd.f32 %v349_v48, %v2281_v1  ;;  %v351_v51 = vpop.f32.mrb[30].mxu1  ;;  %1081 = vmatprep.mubr.bf16.mxu0 %v576_v43  ;;  %v427_v52 = vadd.f32 %v426_v34, %v2321_v10  ;;  %v1805_v53 = vpop.f32.mrb[30].mxu0 }
 0x127   :  { %v525_v54 = vmax.f32 %v348_v47, 0.0  ;;  %v352_v55 = vadd.f32 %v351_v51, %v2278_v59  ;;  %v353_v56 = vpop.f32.mrb[31].mxu1  ;;  %1001 = vmatmul.mubr.bf16.gmra.mrb[64].mxu1 %v2262_v31  ;;  %1082 = vmatmul.mubr.bf16.gmra.mrb[56].mxu0 %v575_v41  ;;  %v507_v57 = vmax.f32 %v435_v49, 0.0  ;;  %v438_v60 = vadd.f32 %v1805_v53, %v2321_v10  ;;  %v429_v61 = vpop.f32.mrb[31].mxu0 }
 0x128   :  { %v526_v62 = vmax.f32 %v350_v50, 0.0  ;;  %v354_v63 = vadd.f32 %v353_v56, %v2281_v1  ;;  %1008 = vmatprep.mubr.bf16.mxu1 %v2285_v7  ;;  %v497_v0 = vmax.f32 %v427_v52, 0.0  ;;  %v430_v3 = vadd.f32 %v429_v61, %v2321_v10 }
 0x129   :  { %v530_v58 = vmax.f32 %v352_v55, 0.0  ;;  %v512_v8 = vmax.f32 %v438_v60, 0.0 }
 0x12a   :  { %v531_v9 = vmax.f32 %v354_v63, 0.0  ;;  %v502_v11 = vmax.f32 %v430_v3, 0.0 }
 0x12b   :  { %v580_v12 = vpack.c.bf16 %v530_v58, %v525_v54  ;;  %v2344_v4 = vpack.c.bf16 %v512_v8, %v507_v57 }
 0x12c   :  { %v581_v31 = vpack.c.bf16 %v531_v9, %v526_v62  ;;  %v357_v13 = vpop.f32.mrb[32].mxu1  ;;  %v567_v14 = vpack.c.bf16 %v502_v11, %v497_v0  ;;  %v1808_v15 = vpop.f32.mrb[32].mxu0  ;;  %v1937_v11 = vld [vmem:[%s2475_s5 + $0x18] sm:$0xff]  }
 0x12d   :  { %v358_v16 = vadd.f32 %v357_v13, %v2278_v59  ;;  %v359_v17 = vpop.f32.mrb[33].mxu1  ;;  %v451_v18 = vadd.f32 %v1808_v15, %v2321_v10  ;;  %v442_v7 = vpop.f32.mrb[33].mxu0  ;;  %v1941_v13 = vld [vmem:[%s2475_s5 + $0x38] sm:$0xff]  }
 0x12e   :  { %v360_v19 = vadd.f32 %v359_v17, %v2281_v1  ;;  %v361_v5 = vpop.f32.mrb[34].mxu1  ;;  %1089 = vmatprep.mubr.bf16.mxu0 %v581_v31  ;;  %v443_v20 = vadd.f32 %v442_v7, %v2321_v10  ;;  %v1809_v21 = vpop.f32.mrb[34].mxu0  ;;  %v1940_v31 = vld [vmem:[%s2475_s5 + $0x30] sm:$0xff]  }
 0x12f   :  { %v535_v22 = vmax.f32 %v358_v16, 0.0  ;;  %v362_v23 = vadd.f32 %v361_v5, %v2278_v59  ;;  %v363_v2 = vpop.f32.mrb[35].mxu1  ;;  %1009 = vmatmul.mubr.bf16.gmra.mrb[68].mxu1 %v2283_v6  ;;  %1090 = vmatmul.mubr.bf16.gmra.mrb[60].mxu0 %v580_v12  ;;  %v527_v24 = vmax.f32 %v451_v18, 0.0  ;;  %v454_v25 = vadd.f32 %v1809_v21, %v2321_v10  ;;  %v445_v26 = vpop.f32.mrb[35].mxu0  ;;  %v1938_v12 = vld [vmem:[%s2475_s5 + $0x20] sm:$0xff]  }
 0x130   :  { %v536_v27 = vmax.f32 %v360_v19, 0.0  ;;  %v364_v28 = vadd.f32 %v363_v2, %v2281_v1  ;;  %1830 = vmatprep.mubr.bf16.mxu1 %v557_v45  ;;  %v517_v29 = vmax.f32 %v443_v20, 0.0  ;;  %v446_v30 = vadd.f32 %v445_v26, %v2321_v10  ;;  %v2392_v2 = vld [vmem:[%s2474_s4] ss:$0 sm:$0xff] }
 0x131   :  { %v540_v32 = vmax.f32 %v362_v23, 0.0  ;;  %v532_v33 = vmax.f32 %v454_v25, 0.0 }
 0x132   :  { %v541_v35 = vmax.f32 %v364_v28, 0.0  ;;  %v522_v36 = vmax.f32 %v446_v30, 0.0 }
 0x133   :  { %v585_v37 = vpack.c.bf16 %v540_v32, %v535_v22  ;;  %v582_v38 = vpack.c.bf16 %v532_v33, %v527_v24 }
 0x134   :  { %v586_v39 = vpack.c.bf16 %v541_v35, %v536_v27  ;;  %v367_v6 = vpop.f32.mrb[36].mxu1  ;;  %v577_v40 = vpack.c.bf16 %v522_v36, %v517_v29  ;;  %v1812_v41 = vpop.f32.mrb[36].mxu0 }
 0x135   :  { %v368_v43 = vadd.f32 %v367_v6, %v2278_v59  ;;  %v369_v44 = vpop.f32.mrb[37].mxu1  ;;  %v467_v46 = vadd.f32 %v1812_v41, %v2321_v10  ;;  %v458_v47 = vpop.f32.mrb[37].mxu0 }
 0x136   :  { %v370_v45 = vadd.f32 %v369_v44, %v2281_v1  ;;  %v371_v48 = vpop.f32.mrb[38].mxu1  ;;  %1097 = vmatprep.mubr.bf16.mxu0 %v586_v39  ;;  %v459_v49 = vadd.f32 %v458_v47, %v2321_v10  ;;  %v1813_v34 = vpop.f32.mrb[38].mxu0 }
 0x137   :  { %v545_v50 = vmax.f32 %v368_v43, 0.0  ;;  %v372_v51 = vadd.f32 %v371_v48, %v2278_v59  ;;  %v373_v52 = vpop.f32.mrb[39].mxu1  ;;  %1098 = vmatmul.mubr.bf16.gmra.mrb[64].mxu0 %v585_v37  ;;  %1831 = vmatmul.mubr.bf16.vlgmr.msra.gmra.mrb[72].mxu1 %v2332_v42  ;;  %v547_v53 = vmax.f32 %v467_v46, 0.0  ;;  %v470_v54 = vadd.f32 %v1813_v34, %v2321_v10  ;;  %v461_v55 = vpop.f32.mrb[39].mxu0  ;;  %v1936_v42 = vld [vmem:[%s2475_s5 + $0x10] sm:$0xff]  }
 0x138   :  { %v546_v56 = vmax.f32 %v370_v45, 0.0  ;;  %v374_v57 = vadd.f32 %v373_v52, %v2281_v1  ;;  %1834 = vmatprep.mubr.bf16.mxu1 %v567_v14  ;;  %v537_v60 = vmax.f32 %v459_v49, 0.0  ;;  %v462_v61 = vadd.f32 %v461_v55, %v2321_v10  ;;  %v1934_v1 = vld [vmem:[%s2475_s5] sm:$0xff]   ;;  %v1935_v10 = vld [vmem:[%s2475_s5 + $0x8] sm:$0xff]  }
 0x139   :  { %v550_v62 = vmax.f32 %v372_v51, 0.0  ;;  %v552_v63 = vmax.f32 %v470_v54, 0.0  ;;  %1846 = vmatprep.subr.bf16.mxu0 %v1934_v1 }
 0x13a   :  { %v551_v0 = vmax.f32 %v374_v57, 0.0  ;;  %v542_v3 = vmax.f32 %v462_v61, 0.0  ;;  %1847 = vmatpush3.bf16.msra.mxu0 %v1934_v1 }
 0x13b   :  { %v590_v59 = vpack.c.bf16 %v550_v62, %v545_v50  ;;  %v592_v58 = vpack.c.bf16 %v552_v63, %v547_v53  ;;  %1848 = vmatprep.subr.bf16.mxu0 %v1935_v10 }
 0x13c   :  { %v591_v8 = vpack.c.bf16 %v551_v0, %v546_v56  ;;  %v587_v9 = vpack.c.bf16 %v542_v3, %v537_v60 }
 0x13e   :  { %1105 = vmatprep.mubr.bf16.mxu0 %v591_v8  ;;  %1849 = vmatpush3.bf16.msra.mxu0 %v1935_v10 }
 0x13f   :  { %1106 = vmatmul.mubr.bf16.gmra.mrb[68].mxu0 %v590_v59  ;;  %1835 = vmatmul.mubr.bf16.gmra.mrb[76].mxu1 %v2344_v4  ;;  %v1939_v4 = vld [vmem:[%s2475_s5 + $0x28] sm:$0xff]  }
 0x140   :  { %1838 = vmatprep.mubr.bf16.mxu1 %v577_v40  ;;  %1850 = vmatprep.subr.bf16.mxu0 %v1936_v42 }
 0x142   :  { %1851 = vmatpush3.bf16.msra.mxu0 %v1936_v42 }
 0x143   :  { %1852 = vmatprep.subr.bf16.mxu0 %v1937_v11 }
 0x146   :  { %1853 = vmatpush3.bf16.msra.mxu0 %v1937_v11 }
 0x147   :  { %1839 = vmatmul.mubr.bf16.gmra.mrb[80].mxu1 %v582_v38  ;;  %1854 = vmatprep.subr.bf16.mxu0 %v1938_v12 }
 0x148   :  { %1842 = vmatprep.mubr.bf16.mxu1 %v587_v9 }
 0x14a   :  { %1855 = vmatpush3.bf16.msra.mxu0 %v1938_v12 }
 0x14b   :  { %1856 = vmatprep.subr.bf16.mxu0 %v1939_v4 }
 0x14e   :  { %1857 = vmatpush3.bf16.msra.mxu0 %v1939_v4 }
 0x14f   :  { %1843 = vmatmul.mubr.bf16.gmra.mrb[84].mxu1 %v592_v58  ;;  %1858 = vmatprep.subr.bf16.mxu0 %v1940_v31 }
 0x152   :  { %1859 = vmatpush3.bf16.msra.mxu0 %v1940_v31 }
 0x153   :  { %1860 = vmatprep.subr.bf16.mxu0 %v1941_v13 }
 0x156   :  { %1861 = vmatpush3.bf16.msra.mxu0 %v1941_v13 }
 0x1ca   :  { %v1652_v14 = vpop.f32.mrb[40].mxu1 }
 0x1cb   :  { %v1653_v15 = vpop.f32.mrb[41].mxu1 }
 0x1cc   :  { %v1654_v16 = vadd.f32 %v1653_v15, %v1652_v14  ;;  %v1655_v17 = vpop.f32.mrb[42].mxu1 }
 0x1cd   :  { %v1656_v18 = vpop.f32.mrb[43].mxu1 }
 0x1ce   :  { %v1657_v7 = vadd.f32 %v1656_v18, %v1655_v17  ;;  %v955_v28 = vadd.f32 %v1654_v16, %v2392_v2 }
 0x1d0   :  { %v958_v37 = vadd.f32 %v1657_v7, %v2392_v2 }
 0x1d2   :  { %v1658_v19 = vpop.f32.mrb[44].mxu1 }
 0x1d3   :  { %v1659_v5 = vpop.f32.mrb[45].mxu1 }
 0x1d4   :  { %v1660_v20 = vadd.f32 %v1659_v5, %v1658_v19  ;;  %v1661_v21 = vpop.f32.mrb[46].mxu1 }
 0x1d5   :  { %v1662_v22 = vpop.f32.mrb[47].mxu1 }
 0x1d6   :  { %v1663_v23 = vadd.f32 %v1662_v22, %v1661_v21  ;;  %v963_v47 = vadd.f32 %v1660_v20, %v2392_v2 }
 0x1d8   :  { %v966_v52 = vadd.f32 %v1663_v23, %v2392_v2 }
 0x1da   :  { %v1664_v24 = vpop.f32.mrb[48].mxu1  ;;  %v1716_v25 = vpop.f32.mrb[40].mxu0 }
 0x1db   :  { %v1665_v26 = vpop.f32.mrb[49].mxu1  ;;  %v1717_v27 = vpop.f32.mrb[41].mxu0 }
 0x1dc   :  { %v1666_v29 = vadd.f32 %v1665_v26, %v1664_v24  ;;  %v1718_v30 = vadd.f32 %v1717_v27, %v1716_v25  ;;  %v1667_v32 = vpop.f32.mrb[50].mxu1  ;;  %v1719_v33 = vpop.f32.mrb[42].mxu0 }
 0x1dd   :  { %v1668_v35 = vpop.f32.mrb[51].mxu1  ;;  %v1720_v36 = vpop.f32.mrb[43].mxu0 }
 0x1de   :  { %v1669_v38 = vadd.f32 %v1668_v35, %v1667_v32  ;;  %v1721_v39 = vadd.f32 %v1720_v36, %v1719_v33  ;;  %v2396_v6 = vadd.f32 %v1718_v30, %v955_v28  ;;  %v971_v63 = vadd.f32 %v1666_v29, %v2392_v2 }
 0x1e0   :  { %v2398_v40 = vadd.f32 %v1721_v39, %v958_v37  ;;  %v974_v1 = vadd.f32 %v1669_v38, %v2392_v2 }
 0x1e2   :  { %v1670_v41 = vpop.f32.mrb[52].mxu1  ;;  %v1722_v43 = vpop.f32.mrb[44].mxu0 }
 0x1e3   :  { %v1671_v44 = vpop.f32.mrb[53].mxu1  ;;  %v1723_v46 = vpop.f32.mrb[45].mxu0 }
 0x1e4   :  { %v1672_v45 = vadd.f32 %v1671_v44, %v1670_v41  ;;  %v1724_v48 = vadd.f32 %v1723_v46, %v1722_v43  ;;  %v1673_v49 = vpop.f32.mrb[54].mxu1  ;;  %v1725_v34 = vpop.f32.mrb[46].mxu0 }
 0x1e5   :  { %v1674_v50 = vpop.f32.mrb[55].mxu1  ;;  %v1726_v51 = vpop.f32.mrb[47].mxu0 }
 0x1e6   :  { %v1675_v53 = vadd.f32 %v1674_v50, %v1673_v49  ;;  %v1727_v54 = vadd.f32 %v1726_v51, %v1725_v34  ;;  %v2402_v55 = vadd.f32 %v1724_v48, %v963_v47  ;;  %v979_v15 = vadd.f32 %v1672_v45, %v2392_v2 }
 0x1e8   :  { %v2404_v56 = vadd.f32 %v1727_v54, %v966_v52  ;;  %v982_v20 = vadd.f32 %v1675_v53, %v2392_v2 }
 0x1ea   :  { %v1676_v57 = vpop.f32.mrb[56].mxu1  ;;  %v1728_v60 = vpop.f32.mrb[48].mxu0 }
 0x1eb   :  { %v1677_v61 = vpop.f32.mrb[57].mxu1  ;;  %v1729_v62 = vpop.f32.mrb[49].mxu0 }
 0x1ec   :  { %v1678_v0 = vadd.f32 %v1677_v61, %v1676_v57  ;;  %v1730_v3 = vadd.f32 %v1729_v62, %v1728_v60  ;;  %v1679_v59 = vpop.f32.mrb[58].mxu1  ;;  %v1731_v58 = vpop.f32.mrb[50].mxu0 }
 0x1ed   :  { %v1680_v8 = vpop.f32.mrb[59].mxu1  ;;  %v1732_v9 = vpop.f32.mrb[51].mxu0 }
 0x1ee   :  { %v1681_v10 = vadd.f32 %v1680_v8, %v1679_v59  ;;  %v1733_v42 = vadd.f32 %v1732_v9, %v1731_v58  ;;  %v2408_v11 = vadd.f32 %v1730_v3, %v971_v63  ;;  %v987_v29 = vadd.f32 %v1678_v0, %v2392_v2 }
 0x1f0   :  { %v2410_v12 = vadd.f32 %v1733_v42, %v974_v1  ;;  %v990_v38 = vadd.f32 %v1681_v10, %v2392_v2 }
 0x1f2   :  { %v1682_v4 = vpop.f32.mrb[60].mxu1  ;;  %v1734_v31 = vpop.f32.mrb[52].mxu0 }
 0x1f3   :  { %v1683_v13 = vpop.f32.mrb[61].mxu1  ;;  %v1735_v14 = vpop.f32.mrb[53].mxu0 }
 0x1f4   :  { %v1684_v16 = vadd.f32 %v1683_v13, %v1682_v4  ;;  %v1736_v17 = vadd.f32 %v1735_v14, %v1734_v31  ;;  %v1685_v18 = vpop.f32.mrb[62].mxu1  ;;  %v1737_v7 = vpop.f32.mrb[54].mxu0 }
 0x1f5   :  { %v1686_v19 = vpop.f32.mrb[63].mxu1  ;;  %v1738_v5 = vpop.f32.mrb[55].mxu0 }
 0x1f6   :  { %v1687_v21 = vadd.f32 %v1686_v19, %v1685_v18  ;;  %v1739_v22 = vadd.f32 %v1738_v5, %v1737_v7  ;;  %v1076_v23 = vadd.f32 %v1736_v17, %v979_v15  ;;  %v995_v49 = vadd.f32 %v1684_v16, %v2392_v2 }
 0x1f8   :  { %v2414_v24 = vadd.f32 %v1739_v22, %v982_v20  ;;  %v998_v57 = vadd.f32 %v1687_v21, %v2392_v2 }
 0x1fa   :  { %v1688_v25 = vpop.f32.mrb[64].mxu1  ;;  %v1740_v26 = vpop.f32.mrb[56].mxu0 }
 0x1fb   :  { %v1689_v27 = vpop.f32.mrb[65].mxu1  ;;  %v1741_v28 = vpop.f32.mrb[57].mxu0 }
 0x1fc   :  { %v1690_v30 = vadd.f32 %v1689_v27, %v1688_v25  ;;  %v1742_v32 = vadd.f32 %v1741_v28, %v1740_v26  ;;  %v1691_v33 = vpop.f32.mrb[66].mxu1  ;;  %v1743_v35 = vpop.f32.mrb[58].mxu0 }
 0x1fd   :  { %v1692_v36 = vpop.f32.mrb[67].mxu1  ;;  %v1744_v37 = vpop.f32.mrb[59].mxu0 }
 0x1fe   :  { %v1693_v39 = vadd.f32 %v1692_v36, %v1691_v33  ;;  %v1745_v41 = vadd.f32 %v1744_v37, %v1743_v35  ;;  %v2418_v43 = vadd.f32 %v1742_v32, %v987_v29  ;;  %v1003_v9 = vadd.f32 %v1690_v30, %v2392_v2 }
 0x200   :  { %v2420_v44 = vadd.f32 %v1745_v41, %v990_v38  ;;  %v1006_v15 = vadd.f32 %v1693_v39, %v2392_v2 }
 0x202   :  { %v1694_v46 = vpop.f32.mrb[68].mxu1  ;;  %v1746_v47 = vpop.f32.mrb[60].mxu0 }
 0x203   :  { %v1695_v45 = vpop.f32.mrb[69].mxu1  ;;  %v1747_v48 = vpop.f32.mrb[61].mxu0 }
 0x204   :  { %v1696_v34 = vadd.f32 %v1695_v45, %v1694_v46  ;;  %v1748_v50 = vadd.f32 %v1747_v48, %v1746_v47  ;;  %v1697_v51 = vpop.f32.mrb[70].mxu1  ;;  %v1749_v52 = vpop.f32.mrb[62].mxu0 }
 0x205   :  { %v1698_v53 = vpop.f32.mrb[71].mxu1  ;;  %v1750_v54 = vpop.f32.mrb[63].mxu0 }
 0x206   :  { %v1699_v60 = vadd.f32 %v1698_v53, %v1697_v51  ;;  %v1751_v61 = vadd.f32 %v1750_v54, %v1749_v52  ;;  %v1092_v62 = vadd.f32 %v1748_v50, %v995_v49  ;;  %v1011_v28 = vadd.f32 %v1696_v34, %v2392_v2 }
 0x208   :  { %v1095_v63 = vadd.f32 %v1751_v61, %v998_v57  ;;  %v1014_v37 = vadd.f32 %v1699_v60, %v2392_v2 }
 0x20a   :  { %v1752_v0 = vpop.f32.mrb[64].mxu0  ;;  %v1832_v3 = vpop.f32.mrb[72].mxu1 }
 0x20b   :  { %v1157_v59 = vadd.f32 %v1832_v3, %v2402_v55  ;;  %v1753_v58 = vpop.f32.mrb[65].mxu0  ;;  %v1148_v8 = vpop.f32.mrb[73].mxu1 }
 0x20c   :  { %v1754_v1 = vadd.f32 %v1753_v58, %v1752_v0  ;;  %v1149_v10 = vadd.f32 %v1148_v8, %v2396_v6  ;;  %v1755_v42 = vpop.f32.mrb[66].mxu0  ;;  %v1833_v4 = vpop.f32.mrb[74].mxu1 }
 0x20d   :  { %v1160_v31 = vadd.f32 %v1833_v4, %v2404_v56  ;;  %v1756_v13 = vpop.f32.mrb[67].mxu0  ;;  %v1151_v14 = vpop.f32.mrb[75].mxu1  ;;  %v1213_v55 = vmax.f32 %v1157_v59, 0.0 }
 0x20e   :  { %v1757_v16 = vadd.f32 %v1756_v13, %v1755_v42  ;;  %v1152_v17 = vadd.f32 %v1151_v14, %v2398_v40  ;;  %v1100_v18 = vadd.f32 %v1754_v1, %v1003_v9  ;;  %v1211_v19 = vmax.f32 %v1149_v10, 0.0  ;;  %v2440_v14 = vld [vmem:[%s2476_s6] ss:$0 sm:$0xff]  ;;  %s2058_s6 = smov [#allocation5]  }
 0x20f   :  { %v1214_v7 = vmax.f32 %v1160_v31, 0.0  ;;  %s1520_s24 = sshll.u32 %s2058_s6, 4  ;;  %s1521_s24 = int_to_ptr.vmem [resolvable:$true] %s1520_s24 }
 0x210   :  { %v1212_v5 = vmax.f32 %v1152_v17, 0.0  ;;  %v1103_v20 = vadd.f32 %v1757_v16, %v1006_v15  ;;  %s2028_s25 = scalar_lea.vmem %s1521_s24, 2048  ;;  %p2033_p9 = scmp.lt.s32.totalorder %s1521_s24, %s1521_s24 }
 0x211   :  { %v1228_v21 = vpack.c.bf16 %v1214_v7, %v1213_v55  ;;  %p2029_p8 = scmp.ne.s32.totalorder %s1521_s24, %s2028_s25  ;;  %p2034_p10 = scmp.lt.s32.totalorder %s2028_s25, %s2028_s25 }
 0x212   :  { %v1227_v22 = vpack.c.bf16 %v1212_v5, %v1211_v19  ;;  %v1758_v6 = vpop.f32.mrb[68].mxu0  ;;  %v1836_v25 = vpop.f32.mrb[76].mxu1 }
 0x213   :  { %v1173_v26 = vadd.f32 %v1836_v25, %v1076_v23  ;;  %v1759_v27 = vpop.f32.mrb[69].mxu0  ;;  %v1164_v56 = vpop.f32.mrb[77].mxu1  ;;  %p2035_p11 = por %p2034_p10, %p2033_p9 }
 0x214   :  { %v1760_v29 = vadd.f32 %v1759_v27, %v1758_v6  ;;  %v1165_v30 = vadd.f32 %v1164_v56, %v2408_v11  ;;  %v1761_v32 = vpop.f32.mrb[70].mxu0  ;;  %v1837_v40 = vpop.f32.mrb[78].mxu1  ;;  %1862 = vmatprep.mubr.bf16.mxu0 %v1227_v22 }
 0x215   :  { %v1176_v33 = vadd.f32 %v1837_v40, %v2414_v24  ;;  %v1762_v35 = vpop.f32.mrb[71].mxu0  ;;  %v1167_v36 = vpop.f32.mrb[79].mxu1  ;;  %1863 = vmatmul.mubr.bf16.vlgmr.msra.gmra.mrb[72].mxu0 %v1228_v21  ;;  %v1217_v41 = vmax.f32 %v1173_v26, 0.0  ;;  %p2036_p12 = pnand %p2035_p11, %p2029_p8 }
 0x216   :  { %v1763_v38 = vadd.f32 %v1762_v35, %v1761_v32  ;;  %v1168_v23 = vadd.f32 %v1167_v36, %v2410_v12  ;;  %v1108_v39 = vadd.f32 %v1760_v29, %v1011_v28  ;;  %v1215_v47 = vmax.f32 %v1165_v30, 0.0 }
 0x217   :  { %v1218_v46 = vmax.f32 %v1176_v33, 0.0 }
 0x218   :  { %v1216_v45 = vmax.f32 %v1168_v23, 0.0  ;;  %v1111_v48 = vadd.f32 %v1763_v38, %v1014_v37 }
 0x219   :  { %v1230_v11 = vpack.c.bf16 %v1218_v46, %v1217_v41 }
 0x21a   :  { %v1229_v49 = vpack.c.bf16 %v1216_v45, %v1215_v47  ;;  %v1840_v34 = vpop.f32.mrb[80].mxu1 }
 0x21b   :  { %v1189_v50 = vadd.f32 %v1840_v34, %v1092_v62  ;;  %v1180_v51 = vpop.f32.mrb[81].mxu1 }
 0x21c   :  { %v1181_v24 = vadd.f32 %v1180_v51, %v2418_v43  ;;  %v1841_v52 = vpop.f32.mrb[82].mxu1  ;;  %1866 = vmatprep.mubr.bf16.mxu0 %v1229_v49 }
 0x21d   :  { %v1192_v53 = vadd.f32 %v1841_v52, %v1095_v63  ;;  %v1183_v2 = vpop.f32.mrb[83].mxu1  ;;  %1867 = vmatmul.mubr.bf16.gmra.mrb[76].mxu0 %v1230_v11  ;;  %v1221_v54 = vmax.f32 %v1189_v50, 0.0 }
 0x21e   :  { %v1184_v12 = vadd.f32 %v1183_v2, %v2420_v44  ;;  %v1219_v60 = vmax.f32 %v1181_v24, 0.0 }
 0x21f   :  { %v1222_v57 = vmax.f32 %v1192_v53, 0.0 }
 0x220   :  { %v1220_v61 = vmax.f32 %v1184_v12, 0.0 }
 0x221   :  { %v1232_v0 = vpack.c.bf16 %v1222_v57, %v1221_v54 }
 0x222   :  { %v1231_v3 = vpack.c.bf16 %v1220_v61, %v1219_v60  ;;  %v1844_v59 = vpop.f32.mrb[84].mxu1 }
 0x223   :  { %v1205_v58 = vadd.f32 %v1844_v59, %v1108_v39  ;;  %v1196_v8 = vpop.f32.mrb[85].mxu1 }
 0x224   :  { %v1197_v62 = vadd.f32 %v1196_v8, %v1100_v18  ;;  %v1845_v9 = vpop.f32.mrb[86].mxu1  ;;  %1870 = vmatprep.mubr.bf16.mxu0 %v1231_v3 }
 0x225   :  { %v1208_v43 = vadd.f32 %v1845_v9, %v1111_v48  ;;  %v1199_v1 = vpop.f32.mrb[87].mxu1  ;;  %1871 = vmatmul.mubr.bf16.gmra.mrb[80].mxu0 %v1232_v0  ;;  %v1225_v10 = vmax.f32 %v1205_v58, 0.0 }
 0x226   :  { %v1200_v63 = vadd.f32 %v1199_v1, %v1103_v20  ;;  %v1223_v4 = vmax.f32 %v1197_v62, 0.0 }
 0x227   :  { %v1226_v42 = vmax.f32 %v1208_v43, 0.0 }
 0x228   :  { %v1224_v44 = vmax.f32 %v1200_v63, 0.0 }
 0x229   :  { %v1234_v31 = vpack.c.bf16 %v1226_v42, %v1225_v10 }
 0x22a   :  { %v1233_v13 = vpack.c.bf16 %v1224_v44, %v1223_v4 }
 0x22c   :  { %1874 = vmatprep.mubr.bf16.mxu0 %v1233_v13 }
 0x22d   :  { %1875 = vmatmul.mubr.bf16.gmra.mrb[84].mxu0 %v1234_v31 }
 0x2e8   :  { %v1864_v15 = vpop.f32.mrb[72].mxu0 }
 0x2e9   :  { %v1349_v16 = vadd.f32 %v1864_v15, %v2440_v14  ;;  %v1340_v17 = vpop.f32.mrb[73].mxu0 }
 0x2ea   :  { %v1341_v18 = vadd.f32 %v2440_v14, %v1340_v17  ;;  %v1865_v55 = vpop.f32.mrb[74].mxu0 }
 0x2eb   :  { %v1613_v7 = vmul.f32 -1.442695, %v1349_v16  ;;  %v1352_v19 = vadd.f32 %v1865_v55, %v2440_v14  ;;  %v1343_v5 = vpop.f32.mrb[75].mxu0 }
 0x2ec   :  { %v1611_v20 = vmul.f32 -1.442695, %v1341_v18  ;;  %v1344_v21 = vadd.f32 %v2440_v14, %v1343_v5 }
 0x2ed   :  { %1942 = vpow2.f32 %v1613_v7  ;;  %v1614_v22 = vmul.f32 -1.442695, %v1352_v19 }
 0x2ee   :  { %1944 = vpow2.f32 %v1611_v20  ;;  %v1612_v6 = vmul.f32 -1.442695, %v1344_v21 }
 0x2ef   :  { %1946 = vpow2.f32 %v1614_v22 }
 0x2f0   :  { %1948 = vpow2.f32 %v1612_v6  ;;  %v1868_v25 = vpop.f32.mrb[76].mxu0 }
 0x2f1   :  { %v1365_v26 = vadd.f32 %v1868_v25, %v2440_v14  ;;  %v1356_v27 = vpop.f32.mrb[77].mxu0 }
 0x2f2   :  { %v1357_v56 = vadd.f32 %v2440_v14, %v1356_v27  ;;  %v1869_v28 = vpop.f32.mrb[78].mxu0 }
 0x2f3   :  { %v1617_v29 = vmul.f32 -1.442695, %v1365_v26  ;;  %v1368_v30 = vadd.f32 %v1869_v28, %v2440_v14  ;;  %v1359_v32 = vpop.f32.mrb[79].mxu0 }
 0x2f4   :  { %v1615_v40 = vmul.f32 -1.442695, %v1357_v56  ;;  %v1360_v33 = vadd.f32 %v2440_v14, %v1359_v32 }
 0x2f5   :  { %1950 = vpow2.f32 %v1617_v29  ;;  %v1618_v35 = vmul.f32 -1.442695, %v1368_v30 }
 0x2f6   :  { %1952 = vpow2.f32 %v1615_v40  ;;  %v1616_v36 = vmul.f32 -1.442695, %v1360_v33 }
 0x2f7   :  { %v1943_v37 = vpop.eup %1942  ;;  %1954 = vpow2.f32 %v1618_v35 }
 0x2f8   :  { %v1945_v38 = vpop.eup %1944  ;;  %v1453_v23 = vadd.f32 1.0, %v1943_v37  ;;  %1956 = vpow2.f32 %v1616_v36  ;;  %v1872_v39 = vpop.f32.mrb[80].mxu0 }
 0x2f9   :  { %v1947_v41 = vpop.eup %1946  ;;  %v1451_v46 = vadd.f32 1.0, %v1945_v38  ;;  %v1381_v47 = vadd.f32 %v1872_v39, %v2440_v14  ;;  %v1372_v45 = vpop.f32.mrb[81].mxu0 }
 0x2fa   :  { %v1949_v48 = vpop.eup %1948  ;;  %1958 = vrcp.f32 %v1453_v23  ;;  %v1454_v11 = vadd.f32 1.0, %v1947_v41  ;;  %v1373_v49 = vadd.f32 %v2440_v14, %v1372_v45  ;;  %v1873_v34 = vpop.f32.mrb[82].mxu0 }
 0x2fb   :  { %1960 = vrcp.f32 %v1451_v46  ;;  %v1452_v50 = vadd.f32 1.0, %v1949_v48  ;;  %v1621_v51 = vmul.f32 -1.442695, %v1381_v47  ;;  %v1384_v24 = vadd.f32 %v1873_v34, %v2440_v14  ;;  %v1375_v52 = vpop.f32.mrb[83].mxu0 }
 0x2fc   :  { %1962 = vrcp.f32 %v1454_v11  ;;  %v1619_v53 = vmul.f32 -1.442695, %v1373_v49  ;;  %v1376_v2 = vadd.f32 %v2440_v14, %v1375_v52 }
 0x2fd   :  { %1964 = vrcp.f32 %v1452_v50  ;;  %v1622_v12 = vmul.f32 -1.442695, %v1384_v24 }
 0x2fe   :  { %1966 = vpow2.f32 %v1621_v51  ;;  %v1620_v54 = vmul.f32 -1.442695, %v1376_v2 }
 0x2ff   :  { %v1951_v57 = vpop.eup %1950  ;;  %1968 = vpow2.f32 %v1619_v53 }
 0x300   :  { %v1953_v60 = vpop.eup %1952  ;;  %v1457_v61 = vadd.f32 1.0, %v1951_v57  ;;  %1970 = vpow2.f32 %v1622_v12  ;;  %v1876_v0 = vpop.f32.mrb[84].mxu0 }
 0x301   :  { %v1955_v3 = vpop.eup %1954  ;;  %v1455_v59 = vadd.f32 1.0, %v1953_v60  ;;  %1972 = vpow2.f32 %v1620_v54  ;;  %v1397_v58 = vadd.f32 %v1876_v0, %v2440_v14  ;;  %v1388_v8 = vpop.f32.mrb[85].mxu0 }
 0x302   :  { %v1957_v62 = vpop.eup %1956  ;;  %1974 = vrcp.f32 %v1457_v61  ;;  %v1458_v9 = vadd.f32 1.0, %v1955_v3  ;;  %v1389_v43 = vadd.f32 %v2440_v14, %v1388_v8  ;;  %v1877_v1 = vpop.f32.mrb[86].mxu0 }
 0x303   :  { %1976 = vrcp.f32 %v1455_v59  ;;  %v1456_v63 = vadd.f32 1.0, %v1957_v62  ;;  %v1625_v10 = vmul.f32 -1.442695, %v1397_v58  ;;  %v1400_v42 = vadd.f32 %v1877_v1, %v2440_v14  ;;  %v1391_v4 = vpop.f32.mrb[87].mxu0 }
 0x304   :  { %v1959_v44 = vpop.eup %1958  ;;  %1978 = vrcp.f32 %v1458_v9  ;;  %v1623_v31 = vmul.f32 -1.442695, %v1389_v43  ;;  %v1392_v13 = vadd.f32 %v2440_v14, %v1391_v4 }
 0x305   :  { %v1961_v15 = vpop.eup %1960  ;;  %1501 = vst [vmem:[#allocation5 + $0x10] sm:$0xff] %v1959_v44  ;;  %1980 = vrcp.f32 %v1456_v63  ;;  %v1626_v16 = vmul.f32 -1.442695, %v1400_v42 }
 0x306   :  { %v1963_v17 = vpop.eup %1962  ;;  %1499 = vst [vmem:[#allocation5] sm:$0xff] %v1961_v15  ;;  %1982 = vpow2.f32 %v1625_v10  ;;  %v1624_v18 = vmul.f32 -1.442695, %v1392_v13 }
 0x307   :  { %v1965_v55 = vpop.eup %1964  ;;  %1502 = vst [vmem:[#allocation5 + $0x18] sm:$0xff] %v1963_v17  ;;  %1984 = vpow2.f32 %v1623_v31 }
 0x308   :  { %v1967_v7 = vpop.eup %1966  ;;  %1500 = vst [vmem:[#allocation5 + $0x8] sm:$0xff] %v1965_v55  ;;  %1986 = vpow2.f32 %v1626_v16 }
 0x309   :  { %v1969_v19 = vpop.eup %1968  ;;  %v1461_v5 = vadd.f32 1.0, %v1967_v7  ;;  %1988 = vpow2.f32 %v1624_v18 }
 0x30a   :  { %v1971_v20 = vpop.eup %1970  ;;  %v1459_v21 = vadd.f32 1.0, %v1969_v19 }
 0x30b   :  { %v1973_v14 = vpop.eup %1972  ;;  %1990 = vrcp.f32 %v1461_v5  ;;  %v1462_v22 = vadd.f32 1.0, %v1971_v20 }
 0x30c   :  { %v1975_v6 = vpop.eup %1974  ;;  %1992 = vrcp.f32 %v1459_v21  ;;  %v1460_v25 = vadd.f32 1.0, %v1973_v14 }
 0x30d   :  { %v1977_v26 = vpop.eup %1976  ;;  %1505 = vst [vmem:[#allocation5 + $0x30] sm:$0xff] %v1975_v6  ;;  %1994 = vrcp.f32 %v1462_v22 }
 0x30e   :  { %v1979_v27 = vpop.eup %1978  ;;  %1503 = vst [vmem:[#allocation5 + $0x20] sm:$0xff] %v1977_v26  ;;  %1996 = vrcp.f32 %v1460_v25 }
 0x30f   :  { %v1981_v56 = vpop.eup %1980  ;;  %1506 = vst [vmem:[#allocation5 + $0x38] sm:$0xff] %v1979_v27 }
 0x310   :  { %v1983_v28 = vpop.eup %1982  ;;  %1504 = vst [vmem:[#allocation5 + $0x28] sm:$0xff] %v1981_v56 }
 0x311   :  { %v1985_v29 = vpop.eup %1984  ;;  %v1465_v30 = vadd.f32 1.0, %v1983_v28 }
 0x312   :  { %v1987_v32 = vpop.eup %1986  ;;  %v1463_v40 = vadd.f32 1.0, %v1985_v29 }
 0x313   :  { %v1989_v33 = vpop.eup %1988  ;;  %1998 = vrcp.f32 %v1465_v30  ;;  %v1466_v35 = vadd.f32 1.0, %v1987_v32 }
 0x314   :  { %2000 = vrcp.f32 %v1463_v40  ;;  %v1464_v36 = vadd.f32 1.0, %v1989_v33 }
 0x315   :  { %v1991_v37 = vpop.eup %1990  ;;  %2002 = vrcp.f32 %v1466_v35 }
 0x316   :  { %v1993_v38 = vpop.eup %1992  ;;  %1509 = vst [vmem:[#allocation5 + $0x50] sm:$0xff] %v1991_v37  ;;  %2004 = vrcp.f32 %v1464_v36 }
 0x317   :  { %v1995_v23 = vpop.eup %1994  ;;  %1507 = vst [vmem:[#allocation5 + $0x40] sm:$0xff] %v1993_v38 }
 0x318   :  { %v1997_v39 = vpop.eup %1996  ;;  %1510 = vst [vmem:[#allocation5 + $0x58] sm:$0xff] %v1995_v23 }
 0x319   :  { %1508 = vst [vmem:[#allocation5 + $0x48] sm:$0xff] %v1997_v39 }
 0x31d   :  { %v1999_v41 = vpop.eup %1998 }
 0x31e   :  { %v2001_v46 = vpop.eup %2000  ;;  %1513 = vst [vmem:[#allocation5 + $0x70] sm:$0xff] %v1999_v41 }
 0x31f   :  { %v2003_v47 = vpop.eup %2002  ;;  %1511 = vst [vmem:[#allocation5 + $0x60] sm:$0xff] %v2001_v46 }
 0x320   :  { %v2005_v45 = vpop.eup %2004  ;;  %1514 = vst [vmem:[#allocation5 + $0x78] sm:$0xff] %v2003_v47 }
 0x321   :  { %1512 = vst [vmem:[#allocation5 + $0x68] sm:$0xff] %v2005_v45 }
 0x322   :  { %2039 = shalt.err (!%p2036_p12)
}
 0x323   :  { %s2040_s28 = scalar_lea.hbm %s2477_s7, 2048 }
 0x324   :  { %p2041_p13 = scmp.ne.s32.totalorder %s2477_s7, %s2040_s28  ;;  %p2044_p0 = scmp.lt.u32.totalorder %s2040_s28, %s2477_s7 }
 0x326   :  { %p2046_p1 = pnand %p2044_p0, %p2041_p13 }
 0x328   :  { %2049 = shalt.err (!%p2046_p1)
}
 0x329   :  { %s2059_s2 = smov 128   ;;  %s2060_s9 = smov 8  }
 0x32a   :  { %1526 = dma.vmem_to_hbm [thread:$0]  %s1521_s24, 2048, %s2477_s7, [#allocation4], %s2059_s2, %s2059_s2, %s2060_s9  }
 0x32b   :  { %2052 = dma.done.wait [#allocation4], 2048  }
 0x32c   :  { %2053 = vsyncadd [#allocation4], 4294965248 }
 0x32d   :  { %1530 = vsyncpa [#allocation3], 1 }
 0x32e   :  { %1531 = vsyncpa [#allocation4], 1 }

</bundles_post_ra>
